<compile_context>
chip_gen: v7x
topology: tpu7x:2x2x1
jax: 0.10.0
libtpu: 0.0.40
codegen_flags: <defaults>
</compile_context>

<pallas_src>
import jax
import jax.numpy as jnp
from jax import lax
from jax.experimental import pallas as pl
from jax.experimental.pallas import tpu as pltpu


def _round_up(x, m):
    return ((x + m - 1) // m) * m


def _cdiv(a, b):
    return (a + b - 1) // b


def _sublane_align(itemsize):
    # sublane packing: f32 -> 8 rows / vreg, bf16 -> 16, int8/fp8 -> 32.
    if itemsize == 1:
        return 32
    if itemsize == 2:
        return 16
    return 8


def _device_profile():
    """Per-generation tile budget + scoped-VMEM limit."""
    try:
        kind = jax.devices()[0].device_kind.lower()
    except Exception:
        kind = ""
    if "v7" in kind:
        # 64 MiB VMEM/TC, 2 TensorCores sharing ~3.2 TB/s HBM: tm=512 reaches the
        # per-TC roofline; balance the parallel grid across both cores.
        return dict(tm=512, tn=512, vmem=48 * 1024 * 1024, two_cores=True)
    if "v6" in kind:
        # 128 MiB VMEM, 918 TF/s: tm=1024 pushes arithmetic intensity past the
        # ~680 flop/B HBM roofline; tn=512 keeps output tiles lane-dense.
        return dict(tm=1024, tn=512, vmem=100 * 1024 * 1024, two_cores=False)
    if "v5e" in kind or "v5 lite" in kind or "v5lite" in kind:
        # 128-wide MXU but 128 MiB VMEM: large tn halves the x re-read factor.
        return dict(tm=512, tn=512, vmem=96 * 1024 * 1024, two_cores=False)
    return dict(tm=512, tn=512, vmem=64 * 1024 * 1024, two_cores=False)


def _choose_tile(dim, pref, align):
    """Pick (tile, padded_dim) for one array dimension.

    Preference (per perf review): (1) whole dim as a single block (always legal,
    zero padding), (2) an exact divisor that is a multiple of `align` (zero
    padding), (3) padded tile with <= ~12.5% waste.
    """
    if dim <= pref:
        return dim, dim                       # block == full dim: no pad, always legal
    if dim % align == 0:
        best = 0
        t = align
        while t <= pref:
            if dim % t == 0:
                best = t
            t += align
        if best >= max(align, pref // 4):
            return best, dim                  # exact divisor: no pad
    t = pref
    while t > align:
        padded = _round_up(dim, t)
        if (padded - dim) * 8 <= padded:      # <= 12.5% padding waste
            return t, padded
        t //= 2
    return align, _round_up(dim, align)


def _make_kernel(use_bias, k_grid):
    """Build the kernel body for the (bias?, K-reduction-grid?) combination."""

    def kernel(*refs):
        if k_grid:
            *io_refs, acc_ref = refs
        else:
            io_refs = refs
        if use_bias:
            x_ref, w_ref, b_ref, o_ref = io_refs
        else:
            x_ref, w_ref, o_ref = io_refs

        def contract():
            # Weight stays in its native [out, in] layout: contract dim 1 of both
            # operands; the MXU consumes the transposed RHS natively (verified to
            # lower without an in-loop vxpose via pl.lower_as_mlir).
            return lax.dot_general(
                x_ref[...], w_ref[...],
                dimension_numbers=(((1,), (1,)), ((), ())),
                preferred_element_type=jnp.float32,
            )

        def finalize(acc):
            if use_bias:
                acc = acc + b_ref[...]        # (1, tn) broadcasts over rows
            o_ref[...] = acc.astype(o_ref.dtype)

        if not k_grid:
            # Full K resident in VMEM: single MXU pass, no accumulator revisits.
            finalize(contract())
        else:
            k = pl.program_id(2)

            @pl.when(k == 0)
            def _():
                acc_ref[...] = jnp.zeros_like(acc_ref)

            acc_ref[...] += contract()

            @pl.when(k == pl.num_programs(2) - 1)
            def _():
                finalize(acc_ref[...])

    return kernel


@jax.jit
def linear_forward(x, weight, bias=None):
    """Pallas implementation of torch.nn.Linear(in_dim, out_dim, bias).

    x:      [..., in_dim]
    weight: [out_dim, in_dim]   (PyTorch convention, used as-is, no transpose)
    bias:   [out_dim] or None
    returns [..., out_dim]
    """
    use_bias = bias is not None

    *lead, in_dim = x.shape
    out_dim, w_in = weight.shape
    assert w_in == in_dim, "weight must be [out_dim, in_dim]"

    xm = x.reshape((-1, in_dim))
    M, K = xm.shape
    N = out_dim

    prof = _device_profile()
    itemsize = jnp.dtype(x.dtype).itemsize
    w_isz = jnp.dtype(weight.dtype).itemsize
    m_align = _sublane_align(itemsize)

    # ---- M / N tiles (prefer no padding) --------------------------------------
    tm, Mp = _choose_tile(M, prof["tm"], m_align)
    tn, Np = _choose_tile(N, prof["tn"], 128)

    # ---- K (contraction): full-resident if it fits the dtype-aware VMEM budget --
    budget = int(prof["vmem"] * 0.85)         # headroom for Mosaic internal scratch

    def _fullk_bytes(kp):
        return (2 * (tm + tn) * kp * itemsize     # double-buffered x & w tiles
                + 2 * tm * tn * itemsize          # double-buffered output tile
                + 2 * tn * itemsize)              # bias tile

    if _fullk_bytes(K) <= budget:
        tk, Kp, k_grid = K, K, False              # whole K resident; no accumulator
    else:
        # K-grid: largest 128-aligned tk that fits, minimizing K steps (avoids the
        # cliff when K barely exceeds the resident threshold -> tk ~ Kp/2).
        fixed = 2 * tm * tn * itemsize + tm * tn * 4 + 2 * tn * itemsize
        tk_max = (budget - fixed) // (2 * (tm + tn) * itemsize)
        tk_max = max(512, (tk_max // 128) * 128)
        kp_min = _round_up(K, 128)
        nsteps = _cdiv(kp_min, tk_max)
        tk = 128 * _cdiv(kp_min // 128, nsteps)
        Kp = tk * nsteps
        k_grid = True

    # ---- v7x: keep the parallel (M,N) tile count even across both TensorCores ----
    if prof["two_cores"]:
        if ((Mp // tm) * (Np // tn)) % 2 == 1:
            if tn % 256 == 0:
                tn //= 2                       # stays a multiple of 128, still divides Np
            elif tm % (2 * m_align) == 0:
                tm //= 2                       # stays sublane-aligned, still divides Mp

    # ---- pad only when unavoidable (zero K-padding contributes nothing) ----------
    if (Mp, Kp) != (M, K):
        xm = jnp.pad(xm, ((0, Mp - M), (0, Kp - K)))
    w = weight
    if (Np, Kp) != (N, K):
        w = jnp.pad(w, ((0, Np - N), (0, Kp - K)))

    gm, gn = Mp // tm, Np // tn

    if k_grid:
        grid = (gm, gn, Kp // tk)
        x_spec = pl.BlockSpec((tm, tk), lambda i, j, k: (i, k))
        # TODO(synk): if profiling shows exposed DMA between K steps, add
        # pipeline_mode=pl.Buffered(3) on w_spec (one extra tk*tn buffer).
        w_spec = pl.BlockSpec((tn, tk), lambda i, j, k: (j, k))
        o_spec = pl.BlockSpec((tm, tn), lambda i, j, k: (i, j))
        b_spec = pl.BlockSpec((1, tn), lambda i, j, k: (0, j))
        scratch = [pltpu.VMEM((tm, tn), jnp.float32)]
        semantics = ("parallel", "parallel", "arbitrary")
        x_reads, w_reads = gn, gm
    else:
        # Reuse-aware ordering: the operand whose re-streaming costs more HBM traffic
        # stays block-resident across the inner grid axis (Pallas skips the re-DMA
        # when the block index repeats between consecutive grid steps).
        traffic_x_res = M * K + gm * N * K        # x resident, weight streamed gm times
        traffic_w_res = N * K + gn * M * K        # weight resident, x streamed gn times
        if traffic_w_res < traffic_x_res:
            grid = (gn, gm)                       # j outer, i inner -> weight resident
            x_spec = pl.BlockSpec((tm, tk), lambda j, i: (i, 0))
            w_spec = pl.BlockSpec((tn, tk), lambda j, i: (j, 0))
            o_spec = pl.BlockSpec((tm, tn), lambda j, i: (i, j))
            b_spec = pl.BlockSpec((1, tn), lambda j, i: (0, j))
            x_reads, w_reads = gn, 1
        else:
            grid = (gm, gn)                       # i outer, j inner -> x resident
            x_spec = pl.BlockSpec((tm, tk), lambda i, j: (i, 0))
            w_spec = pl.BlockSpec((tn, tk), lambda i, j: (j, 0))
            o_spec = pl.BlockSpec((tm, tn), lambda i, j: (i, j))
            b_spec = pl.BlockSpec((1, tn), lambda i, j: (0, j))
            x_reads, w_reads = 1, gm
        scratch = []
        semantics = ("parallel", "parallel")

    operands = [xm, w]
    in_specs = [x_spec, w_spec]
    if use_bias:
        b2 = bias if Np == N else jnp.pad(bias, ((0, Np - N),))
        operands.append(b2.reshape((1, Np)))
        in_specs.append(b_spec)

    # Honest traffic estimate (operand re-read factors included) for XLA scheduling.
    bytes_accessed = (x_reads * M * K * itemsize
                      + w_reads * N * K * w_isz
                      + M * N * itemsize)
    if use_bias:
        bytes_accessed += N * jnp.dtype(bias.dtype).itemsize
    cost = pl.CostEstimate(flops=2 * M * N * K, transcendentals=0,
                           bytes_accessed=int(bytes_accessed))

    out = pl.pallas_call(
        _make_kernel(use_bias, k_grid),
        out_shape=jax.ShapeDtypeStruct((Mp, Np), x.dtype),
        grid_spec=pltpu.PrefetchScalarGridSpec(
            num_scalar_prefetch=0,
            grid=grid,
            in_specs=in_specs,
            out_specs=o_spec,
            scratch_shapes=scratch,
        ),
        compiler_params=pltpu.CompilerParams(
            dimension_semantics=semantics,
            vmem_limit_bytes=prof["vmem"],
        ),
        cost_estimate=cost,
    )(*operands)

    if (Mp, Np) != (M, N):
        out = out[:M, :N]
    return out.reshape((*lead, N))


def init_linear_params(key, in_dim, out_dim, use_bias=True, dtype=jnp.float32):
    """Deterministic stand-in for initializer.default_weight_init:
    uniform(-1/sqrt(in_dim), 1/sqrt(in_dim)), like PyTorch's default."""
    kw, kb = jax.random.split(key)
    bound = 1.0 / jnp.sqrt(jnp.asarray(in_dim, dtype))
    weight = jax.random.uniform(kw, (out_dim, in_dim), dtype, -bound, bound)
    bias = (
        jax.random.uniform(kb, (out_dim,), dtype, -bound, bound)
        if use_bias
        else None
    )
    return weight, bias


if __name__ == "__main__":
    key = jax.random.PRNGKey(0)
    k_x, k_p = jax.random.split(key)

    batch, seq, in_dim, out_dim = 2, 8, 32, 16
    x = jax.random.normal(k_x, (batch, seq, in_dim), jnp.float32)
    weight, bias = init_linear_params(k_p, in_dim, out_dim, use_bias=True)

    # Bias path (matches torch.nn.Linear forward).
    y = linear_forward(x, weight, bias)
    y = jax.block_until_ready(y)
    y_ref = x @ weight.T + bias
    assert y.shape == (batch, seq, out_dim)
    assert jnp.allclose(y, y_ref, atol=1e-5, rtol=1e-5)

    # No-bias path.
    y2 = linear_forward(x, weight, None)
    y2 = jax.block_until_ready(y2)
    assert jnp.allclose(y2, x @ weight.T, atol=1e-5, rtol=1e-5)

    print("KERNEL_OK")
</pallas_src>

<mosaic_0001>
module attributes {stable_mosaic.version = 11 : i64} {
  func.func @kernel(%arg0: i32, %arg1: i32, %arg2: memref<16x32xf32, #tpu.memory_space<vmem>>, %arg3: memref<16x32xf32, #tpu.memory_space<vmem>>, %arg4: memref<1x16xf32, #tpu.memory_space<vmem>>, %arg5: memref<16x16xf32, #tpu.memory_space<vmem>>) attributes {dimension_semantics = [#tpu.dimension_semantics<parallel>, #tpu.dimension_semantics<parallel>], iteration_bounds = array<i64: 1, 1>, scalar_prefetch = 0 : i64, scratch_operands = 0 : i64, tpu.core_type = #tpu.core_type<tc>, window_params = [{transform_indices = @transform_0, window_bounds = array<i64: 16, 32>}, {transform_indices = @transform_1, window_bounds = array<i64: 16, 32>}, {transform_indices = @transform_2, window_bounds = array<i64: 1, 16>}, {transform_indices = @transform_3, window_bounds = array<i64: 16, 16>}]} {
    %c0 = arith.constant 0 : index
    %c0_0 = arith.constant 0 : index
    %0 = vector.load %arg2[%c0, %c0_0] : memref<16x32xf32, #tpu.memory_space<vmem>>, vector<16x32xf32>
    %c0_1 = arith.constant 0 : index
    %c0_2 = arith.constant 0 : index
    %1 = vector.load %arg3[%c0_1, %c0_2] : memref<16x32xf32, #tpu.memory_space<vmem>>, vector<16x32xf32>
    %cst = arith.constant dense<0.000000e+00> : vector<16x16xf32>
    %2 = tpu.matmul %0, %1, %cst {dimension_numbers = #tpu.dot_dimension_numbers<[1], [1], [0], [0], [0, 0, 1, 0], [], []>} : vector<16x32xf32>, vector<16x32xf32>, vector<16x16xf32> -> vector<16x16xf32>
    %c0_3 = arith.constant 0 : index
    %c0_4 = arith.constant 0 : index
    %3 = vector.load %arg4[%c0_3, %c0_4] : memref<1x16xf32, #tpu.memory_space<vmem>>, vector<1x16xf32>
    %4 = vector.broadcast %3 : vector<1x16xf32> to vector<16x16xf32>
    %5 = arith.addf %2, %4 : vector<16x16xf32>
    %c0_5 = arith.constant 0 : index
    %c0_6 = arith.constant 0 : index
    %6 = vector.load %arg5[%c0_5, %c0_6] : memref<16x16xf32, #tpu.memory_space<vmem>>, vector<16x16xf32>
    tpu.vector_store %arg5[%c0_5, %c0_6], %5 {strides = array<i32>} : memref<16x16xf32, #tpu.memory_space<vmem>>, vector<16x16xf32>,
    return
  }
  func.func @transform_0(%arg0: i32, %arg1: i32) -> (i32, i32) {
    %c0_i32 = arith.constant 0 : i32
    %c0_i32_0 = arith.constant 0 : i32
    return %arg0, %c0_i32 : i32, i32
  }
  func.func @transform_1(%arg0: i32, %arg1: i32) -> (i32, i32) {
    %c0_i32 = arith.constant 0 : i32
    %c0_i32_0 = arith.constant 0 : i32
    return %arg1, %c0_i32 : i32, i32
  }
  func.func @transform_2(%arg0: i32, %arg1: i32) -> (i32, i32) {
    %c0_i32 = arith.constant 0 : i32
    %c0_i32_0 = arith.constant 0 : i32
    return %c0_i32, %arg1 : i32, i32
  }
  func.func @transform_3(%arg0: i32, %arg1: i32) -> (i32, i32) {
    %c0_i32 = arith.constant 0 : i32
    return %arg0, %arg1 : i32, i32
  }
}

</mosaic_0001>

<bundles_post_ra>
// kernel: linear_forward.1
= control target key start
LH: loop header
LB: loop body
LE: loop exit
PB: predicated region body
PF: predicated region fallthrough
CT: control target
= control target key end

     0   :  { %8 = vsyncpa [#allocation3], 0  ;;  %s386_s0 = inlined_call_operand.hbm [shape: f32[16,32], index: 0, kind: input, shape index: {}]   ;;  %s387_s1 = inlined_call_operand.hbm [shape: f32[16,32], index: 1, kind: input, shape index: {}]   ;;  %s388_s2 = inlined_call_operand.hbm [shape: f32[1,16], index: 2, kind: input, shape index: {}]   ;;  %s389_s3 = inlined_call_operand.hbm [shape: f32[16,16], index: 3, kind: output, shape index: {}]  }
   0x1   :  { %9 = vsyncpa [#allocation6], 0 }
   0x2   :  { %10 = vsyncpa [#allocation4], 0  ;;  %s296_s12 = smov [#allocation5]   ;;  %s297_s14 = smov [#allocation2]  }
   0x3   :  { %s28_s13 = sshll.u32 %s296_s12, 4  ;;  %s16_s15 = sshll.u32 %s297_s14, 4  ;;  %s29_s13 = int_to_ptr.vmem [resolvable:$true] %s28_s13  ;;  %s322_s15 = int_to_ptr.vmem [resolvable:$true] %s16_s15 }
   0x4   :  { %s202_s18 = scalar_lea.hbm %s387_s1, 256 }
   0x5   :  { %p203_p0 = scmp.ne.s32.totalorder %s387_s1, %s202_s18  ;;  %p206_p1 = scmp.lt.u32.totalorder %s202_s18, %s387_s1 }
   0x7   :  { %p208_p2 = pnand %p206_p1, %p203_p0 }
   0x9   :  { %211 = shalt.err (!%p208_p2)
}
   0xa   :  { %s212_s23 = scalar_lea.vmem %s29_s13, 256  ;;  %p217_p4 = scmp.lt.s32.totalorder %s29_s13, %s29_s13 }
   0xb   :  { %p213_p3 = scmp.ne.s32.totalorder %s29_s13, %s212_s23  ;;  %p218_p5 = scmp.lt.s32.totalorder %s212_s23, %s212_s23 }
   0xd   :  { %p219_p6 = por %p218_p5, %p217_p4 }
   0xf   :  { %p220_p7 = pnand %p219_p6, %p213_p3 }
  0x11   :  { %223 = shalt.err (!%p220_p7)
}
  0x12   :  { %s298_s24 = smov 128   ;;  %s299_s25 = smov 8  }
  0x13   :  { %34 = dma.hbm_to_vmem [thread:$0]  %s387_s1, 256, %s29_s13, [#allocation6], %s298_s24, %s298_s24, %s299_s25  }
  0x14   :  { %s224_s30 = scalar_lea.hbm %s386_s0, 256 }
  0x15   :  { %p225_p8 = scmp.ne.s32.totalorder %s386_s0, %s224_s30  ;;  %p228_p9 = scmp.lt.u32.totalorder %s224_s30, %s386_s0 }
  0x17   :  { %p230_p10 = pnand %p228_p9, %p225_p8 }
  0x19   :  { %233 = shalt.err (!%p230_p10)
}
  0x1a   :  { %s234_s8 = scalar_lea.vmem %s322_s15, 256  ;;  %p239_p12 = scmp.lt.s32.totalorder %s322_s15, %s322_s15 }
  0x1b   :  { %p235_p11 = scmp.ne.s32.totalorder %s322_s15, %s234_s8  ;;  %p240_p13 = scmp.lt.s32.totalorder %s234_s8, %s234_s8 }
  0x1d   :  { %p241_p0 = por %p240_p13, %p239_p12 }
  0x1f   :  { %p242_p1 = pnand %p241_p0, %p235_p11 }
  0x21   :  { %245 = shalt.err (!%p242_p1)
}
  0x22   :  { %22 = dma.hbm_to_vmem [thread:$0]  %s386_s0, 256, %s322_s15, [#allocation3], %s298_s24, %s298_s24, %s299_s25  }
  0x23   :  { %s300_s10 = smov [#allocation7]   ;;  %s246_s14 = scalar_lea.hbm %s388_s2, 16 }
  0x24   :  { %s41_s11 = sshll.u32 %s300_s10, 4  ;;  %p247_p2 = scmp.ne.s32.totalorder %s388_s2, %s246_s14  ;;  %s42_s11 = int_to_ptr.vmem [resolvable:$true] %s41_s11 }
  0x25   :  { %p250_p3 = scmp.lt.u32.totalorder %s246_s14, %s388_s2 }
  0x27   :  { %p252_p4 = pnand %p250_p3, %p247_p2 }
  0x29   :  { %255 = shalt.err (!%p252_p4)
}
  0x2a   :  { %s256_s20 = scalar_lea.vmem %s42_s11, 16  ;;  %s260_s0 = scalar_lea.vmem %s42_s11, 32 }
  0x2b   :  { %p257_p5 = scmp.ne.s32.totalorder %s42_s11, %s256_s20  ;;  %p261_p6 = scmp.lt.s32.totalorder %s42_s11, %s42_s11 }
  0x2c   :  { %p262_p7 = scmp.lt.s32.totalorder %s260_s0, %s256_s20 }
  0x2e   :  { %p263_p8 = por %p262_p7, %p261_p6 }
  0x30   :  { %p264_p9 = pnand %p263_p8, %p257_p5 }
  0x32   :  { %267 = shalt.err (!%p264_p9)
}
  0x33   :  { %44 = dma.hbm_to_vmem [thread:$0]  %s388_s2, 16, %s42_s11, [#allocation6]  }
  0x34   :  { %290 = dma.done.wait [#allocation3], 256  }
  0x35   :  { %291 = vsyncadd [#allocation3], 4294967040 }
  0x36   :  { %292 = dma.done.wait [#allocation6], 272  }
  0x37   :  { %293 = vsyncadd [#allocation6], 4294967024  ;;  %vm65_vm0 = vcmask 261120   ;;  %v56_v0 = vld [vmem:[#allocation5] sm:$0xff]  ;;  %v57_v1 = vld [vmem:[#allocation5 + $0x8] sm:$0xff]  ;;  %s301_s22 = smov [#allocation8]  }
  0x38   :  { %vm191_vm1 = vmpackc.low %vm65_vm0, %vm65_vm0  ;;  %v54_v2 = vld [vmem:[#allocation2] sm:$0xff]  ;;  %v190_v3 = vpack.c.bf16 %v57_v1, %v56_v0  ;;  %v55_v4 = vld [vmem:[#allocation2 + $0x8] sm:$0xff]  ;;  %s161_s23 = sshll.u32 %s301_s22, 4  ;;  %vm153_vm2 = vcmask 130048   ;;  %s162_s23 = int_to_ptr.vmem [resolvable:$true] %s161_s23 }
  0x39   :  { %187 = vmatprep.mubr.msk.f32.mxu0 %vm65_vm0, %v54_v2  ;;  %v174_v5 = vld [vmem:[#allocation7] ss:$0 sm:$0xff]  ;;  %s268_s2 = scalar_lea.vmem %s162_s23, 256  ;;  %p273_p11 = scmp.lt.s32.totalorder %s162_s23, %s162_s23 }
  0x3a   :  { %192 = vmatprep.subr.msk.bf16.mxu0 %vm191_vm1, %v190_v3  ;;  %p269_p10 = scmp.ne.s32.totalorder %s162_s23, %s268_s2  ;;  %p274_p12 = scmp.lt.s32.totalorder %s268_s2, %s268_s2 }
  0x3b   :  { %195 = vmatpush3.bf16.xpose.msk.msra.mxu0 %vm191_vm1, %v190_v3 }
  0x3c   :  { %p275_p13 = por %p274_p12, %p273_p11 }
  0x3e   :  { %p276_p0 = pnand %p275_p13, %p269_p10 }
  0x42   :  { %188 = vmatmul.mubr.msk.f32.vlgmr.msra.gmra.mrb[0].mxu0 %vm65_vm0, %v55_v4 }
 0x115   :  { %v189_v6 = vpop.f32.mrb[0].mxu0 }
 0x116   :  { %v150_v7 = vadd.f32 %v189_v6, %v174_v5  ;;  %v144_v8 = vpop.f32.mrb[1].mxu0 }
 0x117   :  { %v145_v9 = vadd.f32 %v174_v5, %v144_v8 }
 0x118   :  { %155 = vst.msk [vmem:[#allocation8 + $0x8] sm:$0xff] %vm153_vm2, %v150_v7 }
 0x119   :  { %154 = vst.msk [vmem:[#allocation8] sm:$0xff] %vm153_vm2, %v145_v9 }
 0x11a   :  { %279 = shalt.err (!%p276_p0)
}
 0x11b   :  { %s280_s28 = scalar_lea.hbm %s389_s3, 256 }
 0x11c   :  { %p281_p1 = scmp.ne.s32.totalorder %s389_s3, %s280_s28  ;;  %p284_p2 = scmp.lt.u32.totalorder %s280_s28, %s389_s3 }
 0x11e   :  { %p286_p3 = pnand %p284_p2, %p281_p1 }
 0x120   :  { %289 = shalt.err (!%p286_p3)
}
 0x121   :  { %167 = dma.vmem_to_hbm [thread:$0]  %s162_s23, 256, %s389_s3, [#allocation4], %s298_s24, %s298_s24, %s299_s25  }
 0x122   :  { %294 = dma.done.wait [#allocation4], 256  }
 0x123   :  { %295 = vsyncadd [#allocation4], 4294967040 }
 0x124   :  { %171 = vsyncpa [#allocation3], 1 }
 0x125   :  { %172 = vsyncpa [#allocation6], 1 }
 0x126   :  { %173 = vsyncpa [#allocation4], 1 }

</bundles_post_ra>
